<compile_context>
chip_gen: v7x
topology: tpu7x:2x2x1
jax: 0.10.0
libtpu: 0.0.40
codegen_flags: <defaults>
</compile_context>

<pallas_src>
import jax
import jax.numpy as jnp
from jax import lax
from jax.experimental import pallas as pl
from jax.experimental.pallas import tpu as pltpu


def _round_up(n, m):
    return -(-n // m) * m


def bottleneck2d(x, params):
    """Bottleneck2D forward. x: (B, C_in, H, W) f32, params: dict of conv/bn tensors."""
    B, C_in, H, W = x.shape
    HW = H * W
    P = params["conv1_w"].shape[0]          # planes
    eps = 1e-5

    # ---- fold BatchNorm (eval mode) ----
    def bn_fold(g, b, m, v):
        s = g * lax.rsqrt(v + eps)
        return s, b - m * s

    s1, t1 = bn_fold(params["bn1_w"], params["bn1_b"], params["bn1_m"], params["bn1_v"])
    s2, t2 = bn_fold(params["bn2_w"], params["bn2_b"], params["bn2_m"], params["bn2_v"])
    s3, t3 = bn_fold(params["bn3_w"], params["bn3_b"], params["bn3_m"], params["bn3_v"])

    # conv1 (1x1) with bn2 folded in; bf16 MXU operand.
    w1f = (s2[:, None] * params["conv1_w"][:, :, 0, 0]).astype(jnp.bfloat16)   # (P, C_in)
    # conv2 (3x3) with bn3 folded in; columns ordered (kh, kw) major, ci minor to
    # match the im2col row layout built inside the kernel.
    w2 = s3[:, None, None, None] * params["conv2_w"]                            # (P, P, 3, 3)
    w2f = jnp.transpose(w2, (0, 2, 3, 1)).reshape(P, 9 * P).astype(jnp.bfloat16)
    # conv3 (1x1), plain.
    w3f = params["conv3_w"][:, :, 0, 0].astype(jnp.bfloat16)                    # (C_in, P)

    # Bias / affine vectors (kept f32; added after f32-accumulated matmuls).
    b1 = s2 * params["conv1_b"] + t2        # (P,)
    b2 = s3 * params["conv2_b"] + t3        # (P,)
    b3 = params["conv3_b"]                  # (C_in,)

    # Pack all per-channel vectors into ONE (R, 1) f32 operand, 8-row-aligned segments.
    vecs = [s1, t1, b1, b2, b3]
    offs, parts, cur = [], [], 0
    for v in vecs:
        n = v.shape[0]
        npad = _round_up(n, 8)
        parts.append(jnp.pad(v.astype(jnp.float32), (0, npad - n)))
        offs.append(cur)
        cur += npad
    consts = jnp.concatenate(parts)[:, None]            # (R, 1) f32
    O_S1, O_T1, O_B1, O_B2, O_B3 = offs
    R = cur

    # Zero-pad geometry: left pad rounded to 128 lanes so the h1 writeback is a
    # lane-aligned unmasked store; right pad covers dh=+1,dw=+1 reads (needs >= W+1).
    PADL = max(128, _round_up(W + 1, 128))
    PADR = max(128, _round_up(W + 1, 128))

    # Free (contiguous) reshape: spatial goes to the lane dimension.
    xf = x.reshape(B, C_in, HW)

    def kernel(x_ref, c_ref, w1_ref, w2_ref, w3_ref, out_ref, zpad_ref, col_ref):
        # Zero ONLY the pad strips, every step (scratch is per-core and uninitialized
        # at each core's first iteration under the 'parallel' grid).
        zpad_ref[:, 0:PADL] = jnp.zeros((P, PADL), jnp.bfloat16)
        zpad_ref[:, PADL + HW:PADL + HW + PADR] = jnp.zeros((P, PADR), jnp.bfloat16)

        xs = x_ref[0].astype(jnp.float32)                      # (C_in, HW)

        s1v = c_ref[O_S1:O_S1 + C_in, :]
        t1v = c_ref[O_T1:O_T1 + C_in, :]
        b1v = c_ref[O_B1:O_B1 + P, :]
        b2v = c_ref[O_B2:O_B2 + P, :]
        b3v = c_ref[O_B3:O_B3 + C_in, :]

        # bn1 + relu (f32 VPU), then bf16 for the MXU.
        a = jnp.maximum(xs * s1v + t1v, 0.0).astype(jnp.bfloat16)

        # conv1 (1x1, bn2 folded) + relu; f32 accumulation, f32 bias/relu.
        h1 = jnp.dot(w1_ref[...], a, preferred_element_type=jnp.float32) + b1v
        h1 = jnp.maximum(h1, 0.0)                              # (P, HW) f32

        # Lane-aligned writeback of h1 into the zero-padded flat buffer.
        zpad_ref[:, PADL:PADL + HW] = h1.astype(jnp.bfloat16)

        # im2col: width masks hoisted once; height OOB is covered by the zero strips.
        ww = lax.broadcasted_iota(jnp.int32, (1, HW), 1) % W
        mask_l = ww > 0                                        # needed for dw == -1
        mask_r = ww < (W - 1)                                  # needed for dw == +1
        for k in range(9):
            dh = k // 3 - 1
            dw = k % 3 - 1
            start = PADL + dh * W + dw
            tap = zpad_ref[:, start:start + HW]                # (P, HW) bf16
            if dw == -1:
                tap = jnp.where(mask_l, tap, 0.0)
            elif dw == 1:
                tap = jnp.where(mask_r, tap, 0.0)
            col_ref[k * P:(k + 1) * P, :] = tap

        # conv2 (3x3, bn3 folded) + relu — single MXU matmul (P, 9P) @ (9P, HW).
        h2 = jnp.dot(w2_ref[...], col_ref[...],
                     preferred_element_type=jnp.float32) + b2v
        h2 = jnp.maximum(h2, 0.0).astype(jnp.bfloat16)         # (P, HW)

        # conv3 (1x1) + residual add with the ORIGINAL input (f32).
        y = jnp.dot(w3_ref[...], h2, preferred_element_type=jnp.float32) + b3v + xs
        out_ref[0] = y.astype(out_ref.dtype)

    # ---- cost estimate & VMEM budget ----
    flops = 2 * B * HW * (P * C_in + 9 * P * P + C_in * P)
    bytes_accessed = (2 * B * C_in * HW * 4
                      + (w1f.size + w2f.size + w3f.size) * 2 + consts.size * 4)
    cost = pl.CostEstimate(flops=int(flops), transcendentals=0,
                           bytes_accessed=int(bytes_accessed))

    lane = lambda n: _round_up(n, 128)
    sub8 = lambda n: _round_up(n, 8)
    sub16 = lambda n: _round_up(n, 16)
    vmem_bytes = (
        4 * sub8(C_in) * lane(HW) * 4                          # x in + out, double-buffered f32
        + 2 * sub8(R) * 128 * 4                                # packed consts
        + 2 * sub16(P) * lane(C_in) * 2                        # w1 bf16
        + 2 * sub16(P) * lane(9 * P) * 2                       # w2 bf16
        + 2 * sub16(C_in) * lane(P) * 2                        # w3 bf16
        + sub16(P) * lane(PADL + HW + PADR) * 2                # zpad scratch bf16
        + sub16(9 * P) * lane(HW) * 2                          # im2col scratch bf16
    )
    vmem_limit = int(min(64 << 20, max(24 << 20, 2 * vmem_bytes)))

    out = pl.pallas_call(
        kernel,
        out_shape=jax.ShapeDtypeStruct((B, C_in, HW), x.dtype),
        grid_spec=pltpu.PrefetchScalarGridSpec(
            num_scalar_prefetch=0,
            grid=(B,),
            in_specs=[
                pl.BlockSpec((1, C_in, HW), lambda b: (b, 0, 0)),
                pl.BlockSpec(consts.shape, lambda b: (0, 0)),
                pl.BlockSpec(w1f.shape, lambda b: (0, 0)),
                pl.BlockSpec(w2f.shape, lambda b: (0, 0)),
                pl.BlockSpec(w3f.shape, lambda b: (0, 0)),
            ],
            out_specs=pl.BlockSpec((1, C_in, HW), lambda b: (b, 0, 0)),
            scratch_shapes=[
                pltpu.VMEM((P, PADL + HW + PADR), jnp.bfloat16),   # zero-padded h1
                pltpu.VMEM((9 * P, HW), jnp.bfloat16),             # im2col buffer
            ],
        ),
        compiler_params=pltpu.CompilerParams(
            dimension_semantics=("parallel",),
            vmem_limit_bytes=vmem_limit),
        cost_estimate=cost,
    )(xf, consts, w1f, w2f, w3f)

    return out.reshape(B, C_in, H, W)


def bottleneck2d_ref(x, p, eps=1e-5):
    """Pure-JAX reference with the exact PyTorch forward structure (eval-mode BN)."""
    def bn(y, g, b, m, v):
        inv = g / jnp.sqrt(v + eps)
        return y * inv[None, :, None, None] + (b - m * inv)[None, :, None, None]

    def conv(y, w, b, pad):
        o = lax.conv_general_dilated(
            y, w, window_strides=(1, 1),
            padding=[(pad, pad), (pad, pad)],
            dimension_numbers=("NCHW", "OIHW", "NCHW"),
            precision=lax.Precision.HIGHEST)
        return o + b[None, :, None, None]

    residual = x
    out = jnp.maximum(bn(x, p["bn1_w"], p["bn1_b"], p["bn1_m"], p["bn1_v"]), 0.0)
    out = conv(out, p["conv1_w"], p["conv1_b"], 0)
    out = jnp.maximum(bn(out, p["bn2_w"], p["bn2_b"], p["bn2_m"], p["bn2_v"]), 0.0)
    out = conv(out, p["conv2_w"], p["conv2_b"], 1)
    out = jnp.maximum(bn(out, p["bn3_w"], p["bn3_b"], p["bn3_m"], p["bn3_v"]), 0.0)
    out = conv(out, p["conv3_w"], p["conv3_b"], 0)
    return out + residual


if __name__ == "__main__":
    B, inplanes, planes, H, W = 2, 16, 8, 16, 16      # H*W = 256 -> lane-dense
    key = jax.random.PRNGKey(0)
    ks = jax.random.split(key, 20)

    def normal(k, shape, scale=1.0):
        return scale * jax.random.normal(k, shape, dtype=jnp.float32)

    x = normal(ks[0], (B, inplanes, H, W))

    params = dict(
        bn1_w=1.0 + 0.1 * normal(ks[1], (inplanes,)),
        bn1_b=0.1 * normal(ks[2], (inplanes,)),
        bn1_m=0.1 * normal(ks[3], (inplanes,)),
        bn1_v=jax.random.uniform(ks[4], (inplanes,), minval=0.5, maxval=1.5,
                                 dtype=jnp.float32),
        conv1_w=normal(ks[5], (planes, inplanes, 1, 1), 1.0 / (inplanes ** 0.5)),
        conv1_b=0.1 * normal(ks[6], (planes,)),
        bn2_w=1.0 + 0.1 * normal(ks[7], (planes,)),
        bn2_b=0.1 * normal(ks[8], (planes,)),
        bn2_m=0.1 * normal(ks[9], (planes,)),
        bn2_v=jax.random.uniform(ks[10], (planes,), minval=0.5, maxval=1.5,
                                 dtype=jnp.float32),
        conv2_w=normal(ks[11], (planes, planes, 3, 3), 1.0 / ((9 * planes) ** 0.5)),
        conv2_b=0.1 * normal(ks[12], (planes,)),
        bn3_w=1.0 + 0.1 * normal(ks[13], (planes,)),
        bn3_b=0.1 * normal(ks[14], (planes,)),
        bn3_m=0.1 * normal(ks[15], (planes,)),
        bn3_v=jax.random.uniform(ks[16], (planes,), minval=0.5, maxval=1.5,
                                 dtype=jnp.float32),
        conv3_w=normal(ks[17], (inplanes, planes, 1, 1), 1.0 / (planes ** 0.5)),
        conv3_b=0.1 * normal(ks[18], (inplanes,)),
    )

    out = jax.block_until_ready(bottleneck2d(x, params))
    ref = bottleneck2d_ref(x, params)

    assert out.shape == (B, inplanes, H, W)
    # bf16 MXU operands (f32 accumulation) vs a Precision.HIGHEST f32 reference:
    # expected error is a few 1e-3; 5e-2 tolerance leaves comfortable margin.
    assert jnp.allclose(out, ref, atol=5e-2, rtol=5e-2), "mismatch vs reference"
    print("KERNEL_OK")
</pallas_src>

<mosaic_0001>
module attributes {stable_mosaic.version = 11 : i64} {
  func.func @kernel(%arg0: i32, %arg1: memref<1x16x256xf32, #tpu.memory_space<vmem>>, %arg2: memref<64x1xf32, #tpu.memory_space<vmem>>, %arg3: memref<8x16xbf16, #tpu.memory_space<vmem>>, %arg4: memref<8x72xbf16, #tpu.memory_space<vmem>>, %arg5: memref<16x8xbf16, #tpu.memory_space<vmem>>, %arg6: memref<1x16x256xf32, #tpu.memory_space<vmem>>, %arg7: memref<8x512xbf16, #tpu.memory_space<vmem>>, %arg8: memref<72x256xbf16, #tpu.memory_space<vmem>>) attributes {dimension_semantics = [#tpu.dimension_semantics<parallel>], iteration_bounds = array<i64: 2>, scalar_prefetch = 0 : i64, scratch_operands = 2 : i64, tpu.core_type = #tpu.core_type<tc>, window_params = [{transform_indices = @transform_0, window_bounds = array<i64: 1, 16, 256>}, {pipeline_mode = #tpu.pipeline_mode<synchronous>, transform_indices = @transform_1, window_bounds = array<i64: 64, 1>}, {pipeline_mode = #tpu.pipeline_mode<synchronous>, transform_indices = @transform_2, window_bounds = array<i64: 8, 16>}, {pipeline_mode = #tpu.pipeline_mode<synchronous>, transform_indices = @transform_3, window_bounds = array<i64: 8, 72>}, {pipeline_mode = #tpu.pipeline_mode<synchronous>, transform_indices = @transform_4, window_bounds = array<i64: 16, 8>}, {transform_indices = @transform_5, window_bounds = array<i64: 1, 16, 256>}]} {
    %cst = arith.constant 0.000000e+00 : bf16
    %0 = vector.broadcast %cst : bf16 to vector<8x128xbf16>
    %c0 = arith.constant 0 : index
    %c0_0 = arith.constant 0 : index
    %1 = vector.load %arg7[%c0, %c0_0] : memref<8x512xbf16, #tpu.memory_space<vmem>>, vector<8x128xbf16>
    tpu.vector_store %arg7[%c0, %c0_0], %0 {strides = array<i32>} : memref<8x512xbf16, #tpu.memory_space<vmem>>, vector<8x128xbf16>,
    %cst_1 = arith.constant 0.000000e+00 : bf16
    %2 = vector.broadcast %cst_1 : bf16 to vector<8x128xbf16>
    %c0_2 = arith.constant 0 : index
    %c384 = arith.constant 384 : index
    %3 = vector.load %arg7[%c0_2, %c384] : memref<8x512xbf16, #tpu.memory_space<vmem>>, vector<8x128xbf16>
    tpu.vector_store %arg7[%c0_2, %c384], %2 {strides = array<i32>} : memref<8x512xbf16, #tpu.memory_space<vmem>>, vector<8x128xbf16>,
    %c0_3 = arith.constant 0 : index
    %c0_4 = arith.constant 0 : index
    %c0_5 = arith.constant 0 : index
    %4 = vector.load %arg1[%c0_3, %c0_4, %c0_5] : memref<1x16x256xf32, #tpu.memory_space<vmem>>, vector<1x16x256xf32>
    %5 = vector.shape_cast %4 : vector<1x16x256xf32> to vector<16x256xf32>
    %c0_6 = arith.constant 0 : index
    %c0_7 = arith.constant 0 : index
    %6 = vector.load %arg2[%c0_6, %c0_7] : memref<64x1xf32, #tpu.memory_space<vmem>>, vector<16x1xf32>
    %c16 = arith.constant 16 : index
    %c0_8 = arith.constant 0 : index
    %7 = vector.load %arg2[%c16, %c0_8] : memref<64x1xf32, #tpu.memory_space<vmem>>, vector<16x1xf32>
    %c32 = arith.constant 32 : index
    %c0_9 = arith.constant 0 : index
    %8 = vector.load %arg2[%c32, %c0_9] : memref<64x1xf32, #tpu.memory_space<vmem>>, vector<8x1xf32>
    %c40 = arith.constant 40 : index
    %c0_10 = arith.constant 0 : index
    %9 = vector.load %arg2[%c40, %c0_10] : memref<64x1xf32, #tpu.memory_space<vmem>>, vector<8x1xf32>
    %c48 = arith.constant 48 : index
    %c0_11 = arith.constant 0 : index
    %10 = vector.load %arg2[%c48, %c0_11] : memref<64x1xf32, #tpu.memory_space<vmem>>, vector<16x1xf32>
    %11 = vector.broadcast %6 : vector<16x1xf32> to vector<16x256xf32>
    %12 = arith.mulf %5, %11 : vector<16x256xf32>
    %13 = vector.broadcast %7 : vector<16x1xf32> to vector<16x256xf32>
    %14 = arith.addf %12, %13 : vector<16x256xf32>
    %cst_12 = arith.constant 0.000000e+00 : f32
    %15 = vector.broadcast %cst_12 : f32 to vector<16x256xf32>
    %16 = arith.maximumf %14, %15 : vector<16x256xf32>
    %17 = arith.truncf %16 : vector<16x256xf32> to vector<16x256xbf16>
    %c0_13 = arith.constant 0 : index
    %c0_14 = arith.constant 0 : index
    %18 = vector.load %arg3[%c0_13, %c0_14] : memref<8x16xbf16, #tpu.memory_space<vmem>>, vector<8x16xbf16>
    %cst_15 = arith.constant dense<0.000000e+00> : vector<8x256xf32>
    %19 = tpu.matmul %18, %17, %cst_15 {dimension_numbers = #tpu.dot_dimension_numbers<[1], [0], [0], [1], [0, 0, 1, 1], [], []>} : vector<8x16xbf16>, vector<16x256xbf16>, vector<8x256xf32> -> vector<8x256xf32>
    %20 = vector.broadcast %8 : vector<8x1xf32> to vector<8x256xf32>
    %21 = arith.addf %19, %20 : vector<8x256xf32>
    %cst_16 = arith.constant 0.000000e+00 : f32
    %22 = vector.broadcast %cst_16 : f32 to vector<8x256xf32>
    %23 = arith.maximumf %21, %22 : vector<8x256xf32>
    %24 = arith.truncf %23 : vector<8x256xf32> to vector<8x256xbf16>
    %c0_17 = arith.constant 0 : index
    %c128 = arith.constant 128 : index
    %25 = vector.load %arg7[%c0_17, %c128] : memref<8x512xbf16, #tpu.memory_space<vmem>>, vector<8x256xbf16>
    tpu.vector_store %arg7[%c0_17, %c128], %24 {strides = array<i32>} : memref<8x512xbf16, #tpu.memory_space<vmem>>, vector<8x256xbf16>,
    %26 = tpu.iota {dimensions = array<i32: 1>} : vector<1x256xi32>
    %c16_i32 = arith.constant 16 : i32
    %c0_i32 = arith.constant 0 : i32
    %27 = arith.cmpi eq, %c16_i32, %c0_i32 : i32
    %c1_i32 = arith.constant 1 : i32
    %28 = arith.select %27, %c1_i32, %c16_i32 : i32
    %29 = vector.broadcast %28 : i32 to vector<1x256xi32>
    %30 = arith.remsi %26, %29 : vector<1x256xi32>
    %c0_i32_18 = arith.constant 0 : i32
    %31 = vector.broadcast %c0_i32_18 : i32 to vector<1x256xi32>
    %32 = arith.cmpi ne, %30, %31 : vector<1x256xi32>
    %c0_i32_19 = arith.constant 0 : i32
    %33 = vector.broadcast %c0_i32_19 : i32 to vector<1x256xi32>
    %34 = arith.cmpi slt, %30, %33 : vector<1x256xi32>
    %c0_i32_20 = arith.constant 0 : i32
    %35 = arith.cmpi slt, %28, %c0_i32_20 : i32
    %36 = vector.broadcast %35 : i1 to vector<1x256xi1>
    %37 = vector.broadcast %36 : vector<1x256xi1> to vector<1x256xi1>
    %38 = arith.xori %34, %37 : vector<1x256xi1>
    %39 = arith.andi %38, %32 : vector<1x256xi1>
    %40 = vector.broadcast %28 : i32 to vector<1x256xi32>
    %41 = arith.addi %30, %40 : vector<1x256xi32>
    %42 = arith.select %39, %41, %30 : vector<1x256xi1>, vector<1x256xi32>
    %c0_i32_21 = arith.constant 0 : i32
    %43 = vector.broadcast %c0_i32_21 : i32 to vector<1x256xi32>
    %44 = arith.cmpi sgt, %42, %43 : vector<1x256xi32>
    %c15_i32 = arith.constant 15 : i32
    %45 = vector.broadcast %c15_i32 : i32 to vector<1x256xi32>
    %46 = arith.cmpi slt, %42, %45 : vector<1x256xi32>
    %c0_22 = arith.constant 0 : index
    %c111 = arith.constant 111 : index
    %47 = vector.load %arg7[%c0_22, %c111] : memref<8x512xbf16, #tpu.memory_space<vmem>>, vector<8x256xbf16>
    %cst_23 = arith.constant 0.000000e+00 : f32
    %48 = arith.truncf %cst_23 : f32 to bf16
    %49 = vector.shape_cast %44 : vector<1x256xi1> to vector<1x256xi1>
    %50 = vector.broadcast %49 : vector<1x256xi1> to vector<8x256xi1>
    %51 = vector.broadcast %48 : bf16 to vector<8x256xbf16>
    %52 = arith.select %50, %47, %51 : vector<8x256xi1>, vector<8x256xbf16>
    %c0_24 = arith.constant 0 : index
    %c0_25 = arith.constant 0 : index
    %53 = vector.load %arg8[%c0_24, %c0_25] : memref<72x256xbf16, #tpu.memory_space<vmem>>, vector<8x256xbf16>
    tpu.vector_store %arg8[%c0_24, %c0_25], %52 {strides = array<i32>} : memref<72x256xbf16, #tpu.memory_space<vmem>>, vector<8x256xbf16>,
    %c0_26 = arith.constant 0 : index
    %c112 = arith.constant 112 : index
    %54 = vector.load %arg7[%c0_26, %c112] : memref<8x512xbf16, #tpu.memory_space<vmem>>, vector<8x256xbf16>
    %c8 = arith.constant 8 : index
    %c0_27 = arith.constant 0 : index
    %55 = vector.load %arg8[%c8, %c0_27] : memref<72x256xbf16, #tpu.memory_space<vmem>>, vector<8x256xbf16>
    tpu.vector_store %arg8[%c8, %c0_27], %54 {strides = array<i32>} : memref<72x256xbf16, #tpu.memory_space<vmem>>, vector<8x256xbf16>,
    %c0_28 = arith.constant 0 : index
    %c113 = arith.constant 113 : index
    %56 = vector.load %arg7[%c0_28, %c113] : memref<8x512xbf16, #tpu.memory_space<vmem>>, vector<8x256xbf16>
    %cst_29 = arith.constant 0.000000e+00 : f32
    %57 = arith.truncf %cst_29 : f32 to bf16
    %58 = vector.shape_cast %46 : vector<1x256xi1> to vector<1x256xi1>
    %59 = vector.broadcast %58 : vector<1x256xi1> to vector<8x256xi1>
    %60 = vector.broadcast %57 : bf16 to vector<8x256xbf16>
    %61 = arith.select %59, %56, %60 : vector<8x256xi1>, vector<8x256xbf16>
    %c16_30 = arith.constant 16 : index
    %c0_31 = arith.constant 0 : index
    %62 = vector.load %arg8[%c16_30, %c0_31] : memref<72x256xbf16, #tpu.memory_space<vmem>>, vector<8x256xbf16>
    tpu.vector_store %arg8[%c16_30, %c0_31], %61 {strides = array<i32>} : memref<72x256xbf16, #tpu.memory_space<vmem>>, vector<8x256xbf16>,
    %c0_32 = arith.constant 0 : index
    %c127 = arith.constant 127 : index
    %63 = vector.load %arg7[%c0_32, %c127] : memref<8x512xbf16, #tpu.memory_space<vmem>>, vector<8x256xbf16>
    %cst_33 = arith.constant 0.000000e+00 : f32
    %64 = arith.truncf %cst_33 : f32 to bf16
    %65 = vector.shape_cast %44 : vector<1x256xi1> to vector<1x256xi1>
    %66 = vector.broadcast %65 : vector<1x256xi1> to vector<8x256xi1>
    %67 = vector.broadcast %64 : bf16 to vector<8x256xbf16>
    %68 = arith.select %66, %63, %67 : vector<8x256xi1>, vector<8x256xbf16>
    %c24 = arith.constant 24 : index
    %c0_34 = arith.constant 0 : index
    %69 = vector.load %arg8[%c24, %c0_34] : memref<72x256xbf16, #tpu.memory_space<vmem>>, vector<8x256xbf16>
    tpu.vector_store %arg8[%c24, %c0_34], %68 {strides = array<i32>} : memref<72x256xbf16, #tpu.memory_space<vmem>>, vector<8x256xbf16>,
    %c0_35 = arith.constant 0 : index
    %c128_36 = arith.constant 128 : index
    %70 = vector.load %arg7[%c0_35, %c128_36] : memref<8x512xbf16, #tpu.memory_space<vmem>>, vector<8x256xbf16>
    %c32_37 = arith.constant 32 : index
    %c0_38 = arith.constant 0 : index
    %71 = vector.load %arg8[%c32_37, %c0_38] : memref<72x256xbf16, #tpu.memory_space<vmem>>, vector<8x256xbf16>
    tpu.vector_store %arg8[%c32_37, %c0_38], %70 {strides = array<i32>} : memref<72x256xbf16, #tpu.memory_space<vmem>>, vector<8x256xbf16>,
    %c0_39 = arith.constant 0 : index
    %c129 = arith.constant 129 : index
    %72 = vector.load %arg7[%c0_39, %c129] : memref<8x512xbf16, #tpu.memory_space<vmem>>, vector<8x256xbf16>
    %cst_40 = arith.constant 0.000000e+00 : f32
    %73 = arith.truncf %cst_40 : f32 to bf16
    %74 = vector.shape_cast %46 : vector<1x256xi1> to vector<1x256xi1>
    %75 = vector.broadcast %74 : vector<1x256xi1> to vector<8x256xi1>
    %76 = vector.broadcast %73 : bf16 to vector<8x256xbf16>
    %77 = arith.select %75, %72, %76 : vector<8x256xi1>, vector<8x256xbf16>
    %c40_41 = arith.constant 40 : index
    %c0_42 = arith.constant 0 : index
    %78 = vector.load %arg8[%c40_41, %c0_42] : memref<72x256xbf16, #tpu.memory_space<vmem>>, vector<8x256xbf16>
    tpu.vector_store %arg8[%c40_41, %c0_42], %77 {strides = array<i32>} : memref<72x256xbf16, #tpu.memory_space<vmem>>, vector<8x256xbf16>,
    %c0_43 = arith.constant 0 : index
    %c143 = arith.constant 143 : index
    %79 = vector.load %arg7[%c0_43, %c143] : memref<8x512xbf16, #tpu.memory_space<vmem>>, vector<8x256xbf16>
    %cst_44 = arith.constant 0.000000e+00 : f32
    %80 = arith.truncf %cst_44 : f32 to bf16
    %81 = vector.shape_cast %44 : vector<1x256xi1> to vector<1x256xi1>
    %82 = vector.broadcast %81 : vector<1x256xi1> to vector<8x256xi1>
    %83 = vector.broadcast %80 : bf16 to vector<8x256xbf16>
    %84 = arith.select %82, %79, %83 : vector<8x256xi1>, vector<8x256xbf16>
    %c48_45 = arith.constant 48 : index
    %c0_46 = arith.constant 0 : index
    %85 = vector.load %arg8[%c48_45, %c0_46] : memref<72x256xbf16, #tpu.memory_space<vmem>>, vector<8x256xbf16>
    tpu.vector_store %arg8[%c48_45, %c0_46], %84 {strides = array<i32>} : memref<72x256xbf16, #tpu.memory_space<vmem>>, vector<8x256xbf16>,
    %c0_47 = arith.constant 0 : index
    %c144 = arith.constant 144 : index
    %86 = vector.load %arg7[%c0_47, %c144] : memref<8x512xbf16, #tpu.memory_space<vmem>>, vector<8x256xbf16>
    %c56 = arith.constant 56 : index
    %c0_48 = arith.constant 0 : index
    %87 = vector.load %arg8[%c56, %c0_48] : memref<72x256xbf16, #tpu.memory_space<vmem>>, vector<8x256xbf16>
    tpu.vector_store %arg8[%c56, %c0_48], %86 {strides = array<i32>} : memref<72x256xbf16, #tpu.memory_space<vmem>>, vector<8x256xbf16>,
    %c0_49 = arith.constant 0 : index
    %c145 = arith.constant 145 : index
    %88 = vector.load %arg7[%c0_49, %c145] : memref<8x512xbf16, #tpu.memory_space<vmem>>, vector<8x256xbf16>
    %cst_50 = arith.constant 0.000000e+00 : f32
    %89 = arith.truncf %cst_50 : f32 to bf16
    %90 = vector.shape_cast %46 : vector<1x256xi1> to vector<1x256xi1>
    %91 = vector.broadcast %90 : vector<1x256xi1> to vector<8x256xi1>
    %92 = vector.broadcast %89 : bf16 to vector<8x256xbf16>
    %93 = arith.select %91, %88, %92 : vector<8x256xi1>, vector<8x256xbf16>
    %c64 = arith.constant 64 : index
    %c0_51 = arith.constant 0 : index
    %94 = vector.load %arg8[%c64, %c0_51] : memref<72x256xbf16, #tpu.memory_space<vmem>>, vector<8x256xbf16>
    tpu.vector_store %arg8[%c64, %c0_51], %93 {strides = array<i32>} : memref<72x256xbf16, #tpu.memory_space<vmem>>, vector<8x256xbf16>,
    %c0_52 = arith.constant 0 : index
    %c0_53 = arith.constant 0 : index
    %95 = vector.load %arg4[%c0_52, %c0_53] : memref<8x72xbf16, #tpu.memory_space<vmem>>, vector<8x72xbf16>
    %c0_54 = arith.constant 0 : index
    %c0_55 = arith.constant 0 : index
    %96 = vector.load %arg8[%c0_54, %c0_55] : memref<72x256xbf16, #tpu.memory_space<vmem>>, vector<72x256xbf16>
    %cst_56 = arith.constant dense<0.000000e+00> : vector<8x256xf32>
    %97 = tpu.matmul %95, %96, %cst_56 {dimension_numbers = #tpu.dot_dimension_numbers<[1], [0], [0], [1], [0, 0, 1, 1], [], []>} : vector<8x72xbf16>, vector<72x256xbf16>, vector<8x256xf32> -> vector<8x256xf32>
    %98 = vector.broadcast %9 : vector<8x1xf32> to vector<8x256xf32>
    %99 = arith.addf %97, %98 : vector<8x256xf32>
    %cst_57 = arith.constant 0.000000e+00 : f32
    %100 = vector.broadcast %cst_57 : f32 to vector<8x256xf32>
    %101 = arith.maximumf %99, %100 : vector<8x256xf32>
    %102 = arith.truncf %101 : vector<8x256xf32> to vector<8x256xbf16>
    %c0_58 = arith.constant 0 : index
    %c0_59 = arith.constant 0 : index
    %103 = vector.load %arg5[%c0_58, %c0_59] : memref<16x8xbf16, #tpu.memory_space<vmem>>, vector<16x8xbf16>
    %cst_60 = arith.constant dense<0.000000e+00> : vector<16x256xf32>
    %104 = tpu.matmul %103, %102, %cst_60 {dimension_numbers = #tpu.dot_dimension_numbers<[1], [0], [0], [1], [0, 0, 1, 1], [], []>} : vector<16x8xbf16>, vector<8x256xbf16>, vector<16x256xf32> -> vector<16x256xf32>
    %105 = vector.broadcast %10 : vector<16x1xf32> to vector<16x256xf32>
    %106 = arith.addf %104, %105 : vector<16x256xf32>
    %107 = arith.addf %106, %5 : vector<16x256xf32>
    %c0_61 = arith.constant 0 : index
    %c0_62 = arith.constant 0 : index
    %c0_63 = arith.constant 0 : index
    %108 = vector.load %arg6[%c0_61, %c0_62, %c0_63] : memref<1x16x256xf32, #tpu.memory_space<vmem>>, vector<1x16x256xf32>
    %109 = vector.shape_cast %108 : vector<1x16x256xf32> to vector<16x256xf32>
    %110 = vector.shape_cast %107 : vector<16x256xf32> to vector<1x16x256xf32>
    tpu.vector_store %arg6[%c0_61, %c0_62, %c0_63], %110 {strides = array<i32>} : memref<1x16x256xf32, #tpu.memory_space<vmem>>, vector<1x16x256xf32>,
    return
  }
  func.func @transform_0(%arg0: i32) -> (i32, i32, i32) {
    %c0_i32 = arith.constant 0 : i32
    %c0_i32_0 = arith.constant 0 : i32
    %c0_i32_1 = arith.constant 0 : i32
    return %arg0, %c0_i32, %c0_i32_0 : i32, i32, i32
  }
  func.func @transform_1(%arg0: i32) -> (i32, i32) {
    %c0_i32 = arith.constant 0 : i32
    %c0_i32_0 = arith.constant 0 : i32
    %c0_i32_1 = arith.constant 0 : i32
    return %c0_i32, %c0_i32_0 : i32, i32
  }
  func.func @transform_2(%arg0: i32) -> (i32, i32) {
    %c0_i32 = arith.constant 0 : i32
    %c0_i32_0 = arith.constant 0 : i32
    %c0_i32_1 = arith.constant 0 : i32
    return %c0_i32, %c0_i32_0 : i32, i32
  }
  func.func @transform_3(%arg0: i32) -> (i32, i32) {
    %c0_i32 = arith.constant 0 : i32
    %c0_i32_0 = arith.constant 0 : i32
    %c0_i32_1 = arith.constant 0 : i32
    return %c0_i32, %c0_i32_0 : i32, i32
  }
  func.func @transform_4(%arg0: i32) -> (i32, i32) {
    %c0_i32 = arith.constant 0 : i32
    %c0_i32_0 = arith.constant 0 : i32
    %c0_i32_1 = arith.constant 0 : i32
    return %c0_i32, %c0_i32_0 : i32, i32
  }
  func.func @transform_5(%arg0: i32) -> (i32, i32, i32) {
    %c0_i32 = arith.constant 0 : i32
    %c0_i32_0 = arith.constant 0 : i32
    %c0_i32_1 = arith.constant 0 : i32
    return %arg0, %c0_i32, %c0_i32_0 : i32, i32, i32
  }
}

</mosaic_0001>

<bundles_post_ra>
// kernel: tpu_custom_call.1
= control target key start
LH: loop header
LB: loop body
LE: loop exit
PB: predicated region body
PF: predicated region fallthrough
CT: control target
= control target key end

     0   :  { %10 = vsyncpa [#allocation5], 0  ;;  %s1229_s0 = inlined_call_operand.vmem [shape: f32[2,16,256], index: 0, kind: input, shape index: {}]   ;;  %s1230_s1 = inlined_call_operand.vmem [shape: f32[64,1], index: 1, kind: input, shape index: {}]   ;;  %s1231_s2 = inlined_call_operand.vmem [shape: bf16[8,16], index: 2, kind: input, shape index: {}]   ;;  %s1232_s3 = inlined_call_operand.vmem [shape: bf16[8,72], index: 3, kind: input, shape index: {}]   ;;  %s1233_s4 = inlined_call_operand.vmem [shape: bf16[16,8], index: 4, kind: input, shape index: {}]   ;;  %s1234_s5 = inlined_call_operand.hbm [shape: f32[2,16,256], index: 5, kind: output, shape index: {}]  }
   0x1   :  { %12 = vsyncpa [#allocation5 + $0x1], 0  ;;  %s1009_s18 = smov 0   ;;  %s1011_s19 = smov 0  }
   0x2   :  { %s1013_s20 = smov 0   ;;  %s1015_s21 = smov 0  }
   0x3 LB: > { %s1030_s22 = sadd.s32 4294967295, %s966_s21   ;;  %s820_s23 = sadd.s32 4294967294, %s966_s21   ;;  %s966_s21 = sphi %s1015_s21, %s1240_s21   ;;  %s962_s20 = sphi %s1013_s20, %s1239_s20   ;;  %s958_s19 = sphi %s1011_s19, %s1238_s19   ;;  %s954_s18 = sphi %s1009_s18, %s1237_s18  }
   0x4   : > { %s1034_s24 = sadd.s32 1, %s966_s21   ;;  %s135_s25 = sadd.s32 1, %s962_s20 }
   0x5   : > { %s132_s26 = ssub.s32 %s966_s21, %s1034_s24  ;;  %p145_p0 = scmp.ne.s32.totalorder %s962_s20, %s958_s19 }
   0x6   : > { %p133_p1 = scmp.eq.s32.totalorder %s132_s26, 0  ;;  %p146_p2 = scmp.eq.s32.totalorder %s1030_s22, 1 }
   0x7   : > { %p151_p3 = scmp.ne.s32.totalorder %s958_s19, %s954_s18  ;;  %p152_p4 = scmp.eq.s32.totalorder %s820_s23, 1 }
   0x8   : > { %s1045_s27 = scalar_select %p133_p1, %s962_s20, %s135_s25  }
   0x9   : > { %p1047_p5 = por %p146_p2, %p145_p0  ;;  %p1051_p6 = por %p152_p4, %p151_p3 }
   0xa   : > { %p823_p7 = scmp.ge.s32.totalorder %s966_s21, 1  ;;  %p190_p8 = scmp.lt.s32.totalorder %s966_s21, 3 }
   0xc   : > { %p191_p9 = pnand %p823_p7, %p190_p8 }
   0xd   : > { %v234_v0 = vld [vmem:[%s1230_s1 + $0x10] sm:$0xff] (!%p191_p9)  ;;  %v232_v1 = vld [vmem:[%s1230_s1] sm:$0xff] (!%p191_p9)  ;;  %v968_v2 = vmov (!%p191_p9), 0   ;;  %v235_v3 = vld [vmem:[%s1230_s1 + $0x18] sm:$0xff] (!%p191_p9)  ;;  %v336_v6 = vlaneseq (!%p191_p9)  ;;  %s969_s15 = smov (!%p191_p9), 113   ;;  %s970_s16 = smov (!%p191_p9), 111  }
   0xe   : > { %194 = sbr.rel (%p191_p9) target bundleno = 996 (0x3e4), region = 40  ;;  %902 = vset.pattern.permute.xlu1 (!%p191_p9), %v968_v2  ;;  %226 = vst [vmem:[#allocation2] sm:$0xf] (!%p191_p9), %v968_v2  ;;  %227 = vst [vmem:[#allocation2 + $0xc] sm:$0xf] (!%p191_p9), %v968_v2  ;;  %901 = vset.pattern.permute.xlu0 (!%p191_p9), %v968_v2  ;;  %v233_v4 = vld [vmem:[%s1230_s1 + $0x8] sm:$0xff] (!%p191_p9) }
   0xf   : > { %256 = vperm.xlu1 (!%p191_p9), %902, %v234_v0   ;;  %242 = vperm.xlu0 (!%p191_p9), %901, %v232_v1   ;;  %v236_v5 = vld [vmem:[%s1230_s1 + $0x20] sm:$0xff] (!%p191_p9)  ;;  %v337_v7 = vand.u32 (!%p191_p9), 127, %v336_v6  ;;  %s971_s17 = smov (!%p191_p9), 1   ;;  %s972_s23 = smov (!%p191_p9), 127   ;;  %vm280_vm6 = vcmask (!%p191_p9), 130048   ;;  %vm463_vm7 = vcmask (!%p191_p9), 7168  }
  0x10   : > { %316 = vmatprep.mubr.bf16.mxu0 (!%p191_p9), %v968_v2  ;;  %653 = vmatprep.mubr.bf16.mxu1 (!%p191_p9), %v968_v2  ;;  %s973_s25 = smov (!%p191_p9), 17   ;;  %s974_s26 = smov (!%p191_p9), 15   ;;  %v274_v35 = vld [vmem:[%s1231_s2] sm:$0xf] (!%p191_p9)  ;;  %vm378_vm9 = vcmask (!%p191_p9), 908288   ;;  %vm424_vm10 = vcmask (!%p191_p9), 924672  }
  0x11   : > { %v338_v8 = vadd.s32 (!%p191_p9), 128, %v337_v7  ;;  %v343_v9 = vand.u32 (!%p191_p9), 15, %v337_v7  ;;  %p218_p10 = scmp.lt.s32.totalorder (!%p191_p9), %s1030_s22, 1  ;;  %s975_s12 = smov (!%p191_p9), 16   ;;  %vm448_vm13 = vcmask (!%p191_p9), 1039360  }
  0x12   : > { %s976_s13 = smov (!%p191_p9), 112   ;;  %s215_s8 = sand.u32 (!%p191_p9), 1, %s958_s19  }
  0x13   : > { %261 = vperm.xlu1 (!%p191_p9), %902, %v235_v3   ;;  %247 = vperm.xlu0 (!%p191_p9), %901, %v233_v4   ;;  %v350_v10 = vand.u32 (!%p191_p9), 15, %v338_v8  ;;  %vm365_vm0 = vcmp.lt.s32.totalorder (!%p191_p9), %v343_v9, 15  ;;  %vm363_vm1 = vcmp.gt.s32.totalorder (!%p191_p9), %v343_v9, 0 }
  0x15   : > { %vm366_vm2 = vcmp.lt.s32.totalorder %v350_v10, 15  ;;  %vm364_vm3 = vcmp.gt.s32.totalorder %v350_v10, 0  ;;  %s219_s30 = scalar_select %p218_p10, %s1030_s22, 1  ;;  %v470_v41 = vld [vmem:[#allocation2 + $0xc] sm:$0xf] }
  0x16   : > { %vm419_vm4 = vmpackc.low %vm366_vm2, %vm365_vm0  ;;  %v492_v7 = vld [vmem:[#allocation2 + $0xc] sm:$0xf] }
  0x17   : > { %277 = vperm.xlu0 %901, %v236_v5   ;;  %v420_v11 = vsel %vm419_vm4, 65537, %v968_v2  ;;  %vm373_vm5 = vmpackc.low %vm364_vm3, %vm363_vm1  ;;  %s849_s6 = sshll.u32 %s219_s30, 5  ;;  %vm439_vm3 = vcmask 121856  }
  0x18   : > { %v374_v12 = vsel %vm373_vm5, 65537, %v968_v2  ;;  %s222_s9 = scalar_lea.vmem %s1229_s0, %s849_s6  ;;  %vm394_vm5 = vcmask 138240  }
  0x19   : > { %375 = vrot.lane.b32.xlu1 %v374_v12, %s970_s16  ;;  %v1091_v13 = vld [vmem:[%s222_s9] sm:$0xff]  ;;  %v1093_v14 = vld [vmem:[%s222_s9 + $0x8] sm:$0xff]  ;;  %v1097_v19 = vld [vmem:[%s222_s9 + $0x10] sm:$0xff] }
  0x1a   : > { %v1099_v20 = vld [vmem:[%s222_s9 + $0x18] sm:$0xff]  ;;  %s824_s9 = sshll.u32 %s215_s8, 5 }
  0x1b   : > { %421 = vrot.lane.b32.xlu0 %v420_v11, %s969_s15  ;;  %s217_s10 = scalar_lea.vmem [#allocation4], %s824_s9 }
  0x1c   : > { %s758_s11 = sshll.u32 %s217_s10, 4  ;;  %s1178_s11 = int_to_ptr.vmem [resolvable:$true] %s758_s11 }
  0x1d   : > { %445 = vrot.lane.b32.xlu1 %v374_v12, %s972_s23 }
  0x1f   : > { %471 = vrot.lane.b32.xlu0 %v420_v11, %s971_s17 }
  0x21   : > { %493 = vrot.lane.b32.xlu1 %v374_v12, %s974_s26 }
  0x23   : > { %530 = vrot.lane.b32.xlu0 %v420_v11, %s973_s25 }
  0x8e   : > { %v257_v15 = vpop.permute.xlu1 %256  ;;  %v243_v16 = vpop.permute.xlu0 %242 }
  0x8f   : > { %v250_v17 = vmul.f32 %v243_v16, %v1091_v13  ;;  %v251_v18 = vmul.f32 %v243_v16, %v1093_v14  ;;  %v514_v16 = vld [vmem:[#allocation2 + $0xc] sm:$0xf] }
  0x91   : > { %v264_v22 = vadd.f32 %v257_v15, %v250_v17  ;;  %v265_v25 = vadd.f32 %v257_v15, %v251_v18  ;;  %v529_v17 = vld [vmem:[#allocation2 + $0xc] sm:$0xf] }
  0x92   : > { %v248_v21 = vpop.permute.xlu0 %247  ;;  %v262_v26 = vpop.permute.xlu1 %261 }
  0x93   : > { %v252_v23 = vmul.f32 %v248_v21, %v1097_v19  ;;  %v253_v24 = vmul.f32 %v248_v21, %v1099_v20  ;;  %v269_v29 = vmax.f32 %v265_v25, 0.0  ;;  %v268_v31 = vmax.f32 %v264_v22, 0.0 }
  0x95   : > { %v266_v27 = vadd.f32 %v262_v26, %v252_v23  ;;  %v267_v28 = vadd.f32 %v262_v26, %v253_v24  ;;  %v238_v24 = vld [vmem:[%s1230_s1 + $0x30] sm:$0xff]  ;;  %v237_v26 = vld [vmem:[%s1230_s1 + $0x28] sm:$0xff] }
  0x96   : > { %v278_v36 = vpop.permute.xlu0 %277  ;;  %v376_v52 = vpop.permute.xlu1 %375 }
  0x97   : > { %v271_v30 = vmax.f32 %v267_v28, 0.0  ;;  %v270_v32 = vmax.f32 %v266_v27, 0.0  ;;  %v377_v53 = vrot.slane %v376_v52, 4  ;;  %v239_v27 = vld [vmem:[%s1230_s1 + $0x38] sm:$0xff] }
  0x99   : > { %v273_v33 = vpack.c.bf16 %v271_v30, %v269_v29  ;;  %v272_v34 = vpack.c.bf16 %v270_v32, %v268_v31  ;;  %v379_v54 = vsel %vm378_vm9, %v377_v53, %v376_v52  ;;  %vm381_vm12 = vcmp.ne.s16.totalorder %v377_v53, 0 }
  0x9a   : > { %v422_v37 = vpop.permute.xlu0 %421  ;;  %v446_v56 = vpop.permute.xlu1 %445  ;;  %vm380_vm11 = vcmp.ne.s16.totalorder %v379_v54, 0 }
  0x9b   : > { %284 = vmatprep.subr.bf16.mxu0 %v273_v33  ;;  %v423_v55 = vrot.slane %v422_v37, 4  ;;  %v447_v60 = vrot.slane %v446_v56, 4 }
  0x9c   : > { %285 = vmatpush1.bf16.msra.mxu0 %v272_v34 }
  0x9d   : > { %v425_v61 = vsel %vm424_vm10, %v423_v55, %v422_v37  ;;  %v449_v1 = vsel %vm448_vm13, %v447_v60, %v446_v56  ;;  %vm427_vm15 = vcmp.ne.s16.totalorder %v423_v55, 0  ;;  %vm451_vm1 = vcmp.ne.s16.totalorder %v447_v60, 0 }
  0x9e   : > { %v472_v38 = vpop.permute.xlu0 %471  ;;  %vm426_vm14 = vcmp.ne.s16.totalorder %v425_v61, 0  ;;  %vm450_vm0 = vcmp.ne.s16.totalorder %v449_v1, 0 }
  0x9f   : > { %827 = vmatmul.mubr.msk.bf16.vlgmr.msra.gmra.mrb[0].mxu0 %vm280_vm6, %v274_v35  ;;  %v473_v39 = vrot.slane %v472_v38, 4 }
  0xa0   : > { %725 = vmatprep.mubr.bf16.mxu0 %v968_v2  ;;  %v494_v2 = vpop.permute.xlu1 %493 }
  0xa1   : > { %v1109_v40 = vsel %vm463_vm7, %v473_v39, %v472_v38  ;;  %vm476_vm8 = vcmp.ne.s16.totalorder %v473_v39, 0  ;;  %v495_v5 = vrot.slane %v494_v2, 4 }
  0xa2   : > { %v478_v42 = vsel %vm476_vm8, %v470_v41, 0  ;;  %v531_v10 = vpop.permute.xlu0 %530  ;;  %vm475_vm4 = vcmp.ne.s16.totalorder %v1109_v40, 0 }
  0xa3   : > { %483 = vrot.lane.b32.xlu0 %v478_v42, %s972_s23  ;;  %vm498_vm2 = vcmp.ne.s16.totalorder %v495_v5, 0  ;;  %v532_v12 = vrot.slane %v531_v10, 4  ;;  %v496_v15 = vsel %vm439_vm3, %v495_v5, %v494_v2 }
  0xa4   : > { %v500_v11 = vsel %vm498_vm2, %v492_v7, 0 }
  0xa5   : > { %vm535_vm8 = vcmp.ne.s16.totalorder %v532_v12, 0  ;;  %v533_v21 = vsel %vm394_vm5, %v532_v12, %v531_v10 }
  0xa6   : > { %v537_v22 = vsel %vm535_vm8, %v529_v17, 0 }
 0x115   : > { %v484_v28 = vpop.permute.xlu0 %483 }
 0x172   : > { %v318_v43 = vpop.f32.mrb[0].mxu0 }
 0x173   : > { %v319_v44 = vadd.f32 %v318_v43, %v278_v36  ;;  %v320_v45 = vpop.f32.mrb[1].mxu0 }
 0x174   : > { %v321_v46 = vadd.f32 %v320_v45, %v278_v36  ;;  %v322_v47 = vpop.f32.mrb[2].mxu0 }
 0x175   : > { %v325_v48 = vmax.f32 %v319_v44, 0.0  ;;  %v323_v49 = vpop.f32.mrb[3].mxu0 }
 0x176   : > { %v326_v50 = vmax.f32 %v321_v46, 0.0 }
 0x178   : > { %v1112_v51 = vpack.c.bf16 %v326_v50, %v325_v48 }
 0x17a   : > { %335 = vst [vmem:[#allocation2 + $0x4] sm:$0xff] %v1112_v51  ;;  %v477_v18 = vsel %vm475_vm4, %v1112_v51, 0 }
 0x181   : > { %v399_v57 = vld [vmem:[#allocation2 + $0x8] sm:$0xf]  ;;  %v398_v58 = vld [vmem:[#allocation2] sm:$0xff] }
 0x182   : > { %404 = vrot.lane.b32.xlu0 %v399_v57, %s975_s12  ;;  %402 = vrot.lane.b32.xlu1 %v398_v58, %s975_s12  ;;  %v368_v59 = vld [vmem:[#allocation2 + $0x8] sm:$0xf]  ;;  %v382_v63 = vsel %vm380_vm11, %v398_v58, 0  ;;  %v428_v4 = vsel %vm426_vm14, %v398_v58, 0  ;;  %v452_v9 = vsel %vm450_vm0, %v398_v58, 0  ;;  %vm497_vm11 = vcmp.ne.s16.totalorder %v496_v15, 0 }
 0x183   : > { %v383_v62 = vsel %vm381_vm12, %v368_v59, 0  ;;  %v414_v0 = vld [vmem:[#allocation2 + $0x8] sm:$0xf]  ;;  %v499_v23 = vsel %vm497_vm11, %v1112_v51, 0  ;;  %vm534_vm12 = vcmp.ne.s16.totalorder %v533_v21, 0  ;;  %vm392_vm14 = vcmask 1043456  }
 0x184   : > { %v429_v3 = vsel %vm427_vm15, %v414_v0, 0  ;;  %v444_v6 = vld [vmem:[#allocation2 + $0x8] sm:$0xf]  ;;  %v536_v25 = vsel %vm534_vm12, %v1112_v51, 0 }
 0x185   : > { %v453_v8 = vsel %vm451_vm1, %v444_v6, 0 }
 0x186   : > { %388 = vrot.lane.b32.xlu0 %v383_v62, %s973_s25  ;;  %386 = vrot.lane.b32.xlu1 %v382_v63, %s973_s25  ;;  %v486_v62 = vrot.slane %v484_v28, 4  ;;  %s904_s25 = scalar_lea.vmem %s1178_s11, 512 }
 0x187   : > { %p905_p11 = scmp.ne.s32.totalorder %s1178_s11, %s904_s25 }
 0x189   : > { %p906_p12 = pnand %p905_p11, %p1047_p5 }
 0x18a   : > { %434 = vrot.lane.b32.xlu0 %v429_v3, %s974_s26  ;;  %432 = vrot.lane.b32.xlu1 %v428_v4, %s974_s26  ;;  %s977_s26 = smov [#allocation4]  }
 0x18b   : > { %p907_p13 = pneg %p906_p12  ;;  %s908_s30 = sshll.u32 %s977_s26, 4  ;;  %s909_s30 = int_to_ptr.vmem [resolvable:$false] %s908_s30 }
 0x18c   : > { %p911_p0 = scmp.lt.s32.totalorder %s1178_s11, %s909_s30 }
 0x18e   : > { %458 = vrot.lane.b32.xlu0 %v453_v8, %s971_s17  ;;  %456 = vrot.lane.b32.xlu1 %v452_v9, %s971_s17 }
 0x192   : > { %505 = vrot.lane.b32.xlu0 %v500_v11, %s969_s15  ;;  %517 = vrot.lane.b32.xlu1 %v1112_v51, %s976_s13 }
 0x196   : > { %519 = vrot.lane.b32.xlu0 %v514_v16, %s976_s13  ;;  %481 = vrot.lane.b32.xlu1 %v477_v18, %s972_s23  ;;  %s851_s13 = sshll.u32 %s1030_s22, 9  ;;  %s1187_s22 = scalar_lea.sflag [#allocation5], %s215_s8 }
 0x197   : > { %s1185_s23 = scalar_lea.hbm %s1234_s5, %s851_s13 }
 0x19a   : > { %542 = vrot.lane.b32.xlu0 %v537_v22, %s970_s16  ;;  %503 = vrot.lane.b32.xlu1 %v499_v23, %s969_s15  ;;  %s910_s15 = scalar_lea.vmem %s909_s30, 1024 }
 0x19b   : > { %p912_p1 = scmp.lt.s32.totalorder %s910_s15, %s904_s25 }
 0x19d   : > { %p913_p2 = por %p912_p1, %p911_p0 }
 0x19e   : > { %670 = vperm.xlu0 %901, %v238_v24   ;;  %540 = vrot.lane.b32.xlu1 %v536_v25, %s970_s16 }
 0x19f   : > { %p914_p3 = pnand %p913_p2, %p907_p13 }
 0x1a2   : > { %562 = vperm.xlu1 %902, %v237_v26  }
 0x1a6   : > { %675 = vperm.xlu1 %902, %v239_v27   ;;  %v550_v27 = vld [vmem:[%s1232_s3] sm:$0xf] }
 0x1f4   : > { %v405_v29 = vpop.permute.xlu0 %404  ;;  %v403_v30 = vpop.permute.xlu1 %402 }
 0x1f5   : > { %v407_v31 = vrot.slane %v405_v29, 4  ;;  %v406_v32 = vrot.slane %v403_v30, 4 }
 0x1f7   : > { %v408_v37 = vsel %vm392_vm14, %v406_v32, %v407_v31 }
 0x1f8   : > { %v389_v33 = vpop.permute.xlu0 %388  ;;  %v387_v34 = vpop.permute.xlu1 %386  ;;  %v410_v42 = vsel %vm280_vm6, %v403_v30, %v408_v37  ;;  %vm524_vm6 = vcmask 916480  }
 0x1f9   : > { %v391_v35 = vrot.slane %v389_v33, 4  ;;  %v390_v36 = vrot.slane %v387_v34, 4 }
 0x1fb   : > { %v393_v38 = vsel %vm392_vm14, %v390_v36, %v391_v35 }
 0x1fc   : > { %v435_v39 = vpop.permute.xlu0 %434  ;;  %v433_v40 = vpop.permute.xlu1 %432  ;;  %v395_v41 = vsel %vm394_vm5, %v387_v34, %v393_v38 }
 0x1fd   : > { %v437_v43 = vrot.slane %v435_v39, 4  ;;  %v436_v44 = vrot.slane %v433_v40, 4  ;;  %v830_v45 = vcombine.high %v395_v41, %v410_v42  ;;  %v829_v46 = vcombine.low %v395_v41, %v410_v42 }
 0x1ff   : > { %621 = vmatprep.subr.bf16.mxu1 %v830_v45  ;;  %v438_v49 = vsel %vm392_vm14, %v436_v44, %v437_v43 }
 0x200   : > { %v459_v47 = vpop.permute.xlu0 %458  ;;  %622 = vmatpush1.bf16.msra.mxu1 %v829_v46  ;;  %v457_v48 = vpop.permute.xlu1 %456  ;;  %v440_v54 = vsel %vm439_vm3, %v433_v40, %v438_v49  ;;  %v903_v40 = vld [vmem:[%s1233_s4] sm:$0xff]  }
 0x201   : > { %v461_v50 = vrot.slane %v459_v47, 4  ;;  %v460_v52 = vrot.slane %v457_v48, 4 }
 0x203   : > { %v462_v53 = vsel %vm392_vm14, %v460_v52, %v461_v50 }
 0x204   : > { %v464_v55 = vsel %vm463_vm7, %v457_v48, %v462_v53  ;;  %v506_v56 = vpop.permute.xlu0 %505  ;;  %v518_v57 = vpop.permute.xlu1 %517  ;;  %vm610_vm7 = vcmask 588800  }
 0x205   : > { %v831_v58 = vcombine.low %v440_v54, %v464_v55  ;;  %v832_v59 = vcombine.high %v440_v54, %v464_v55  ;;  %v521_v1 = vrot.slane %v518_v57, 4  ;;  %v508_v3 = vrot.slane %v506_v56, 4 }
 0x207   : > { %623 = vmatprep.subr.bf16.mxu1 %v832_v59 }
 0x208   : > { %v520_v60 = vpop.permute.xlu0 %519  ;;  %624 = vmatpush1.bf16.msra.mxu1 %v831_v58  ;;  %v482_v61 = vpop.permute.xlu1 %481 }
 0x209   : > { %v522_v63 = vrot.slane %v520_v60, 4  ;;  %v485_v0 = vrot.slane %v482_v61, 4 }
 0x20b   : > { %v487_v2 = vsel %vm392_vm14, %v485_v0, %v486_v62  ;;  %v523_v7 = vsel %vm392_vm14, %v521_v1, %v522_v63 }
 0x20c   : > { %v488_v4 = vsel %vm448_vm13, %v482_v61, %v487_v2  ;;  %v504_v5 = vpop.permute.xlu1 %503  ;;  %v543_v6 = vpop.permute.xlu0 %542  ;;  %v525_v15 = vsel %vm524_vm6, %v518_v57, %v523_v7 }
 0x20d   : > { %v833_v8 = vcombine.low %v1112_v51, %v488_v4  ;;  %v834_v9 = vcombine.high %v1112_v51, %v488_v4  ;;  %v507_v10 = vrot.slane %v504_v5, 4  ;;  %v545_v12 = vrot.slane %v543_v6, 4 }
 0x20f   : > { %v509_v11 = vsel %vm392_vm14, %v507_v10, %v508_v3  ;;  %625 = vmatprep.subr.bf16.mxu1 %v834_v9 }
 0x210   : > { %v510_v16 = vsel %vm424_vm10, %v504_v5, %v509_v11  ;;  %626 = vmatpush1.bf16.msra.mxu1 %v833_v8  ;;  %v541_v17 = vpop.permute.xlu1 %540 }
 0x211   : > { %v835_v18 = vcombine.low %v510_v16, %v525_v15  ;;  %v836_v21 = vcombine.high %v510_v16, %v525_v15  ;;  %v544_v22 = vrot.slane %v541_v17, 4 }
 0x213   : > { %v546_v23 = vsel %vm392_vm14, %v544_v22, %v545_v12  ;;  %627 = vmatprep.subr.bf16.mxu1 %v836_v21 }
 0x214   : > { %v547_v24 = vsel %vm378_vm9, %v541_v17, %v546_v23  ;;  %628 = vmatpush1.bf16.msra.mxu1 %v835_v18  ;;  %vm683_vm9 = vcmask 64512  }
 0x215   : > { %v837_v51 = vcombine.low %v547_v24, %v547_v24  ;;  %v838_v25 = vcombine.high %v547_v24, %v547_v24 }
 0x217   : > { %839 = vmatprep.subr.msk.bf16.mxu1 %vm392_vm14, %v838_v25  ;;  %v616_v26 = vsel %vm392_vm14, %v837_v51, 0 }
 0x218   : > { %630 = vmatpush1.bf16.msra.mxu1 %v616_v26 }
 0x21b   : > { %840 = vmatmul.mubr.msk.bf16.vlgmr.msra.gmra.mrb[0].mxu1 %vm610_vm7, %v550_v27 }
 0x21d   : > { %v671_v41 = vpop.permute.xlu0 %670 }
 0x221   : > { %v563_v28 = vpop.permute.xlu1 %562 }
 0x225   : > { %v676_v45 = vpop.permute.xlu1 %675 }
 0x2ee   : > { %v655_v29 = vpop.f32.mrb[0].mxu1 }
 0x2ef   : > { %v656_v30 = vadd.f32 %v655_v29, %v563_v28  ;;  %v657_v31 = vpop.f32.mrb[1].mxu1 }
 0x2f0   : > { %v658_v32 = vadd.f32 %v657_v31, %v563_v28  ;;  %v659_v33 = vpop.f32.mrb[2].mxu1 }
 0x2f1   : > { %v662_v34 = vmax.f32 %v656_v30, 0.0  ;;  %v660_v35 = vpop.f32.mrb[3].mxu1 }
 0x2f2   : > { %v663_v36 = vmax.f32 %v658_v32, 0.0 }
 0x2f3   : > { %v664_v37 = vpack.c.bf16 %v662_v34, %v662_v34 }
 0x2f4   : > { %v665_v38 = vpack.c.bf16 %v663_v36, %v663_v36 }
 0x2f5   : > { %v688_v39 = vsel %vm392_vm14, %v664_v37, 0 }
 0x2f6   : > { %842 = vmatprep.subr.msk.bf16.mxu0 %vm392_vm14, %v665_v38 }
 0x2f7   : > { %694 = vmatpush1.bf16.msra.mxu0 %v688_v39 }
 0x2fa   : > { %843 = vmatmul.mubr.msk.bf16.vlgmr.msra.gmra.mrb[4].mxu0 %vm683_vm9, %v903_v40 }
 0x3cd   : > { %v727_v42 = vpop.f32.mrb[4].mxu0 }
 0x3ce   : > { %v728_v43 = vadd.f32 %v727_v42, %v671_v41  ;;  %v729_v44 = vpop.f32.mrb[5].mxu0 }
 0x3cf   : > { %v730_v46 = vadd.f32 %v729_v44, %v671_v41  ;;  %v731_v47 = vpop.f32.mrb[6].mxu0 }
 0x3d0   : > { %v736_v48 = vadd.f32 %v728_v43, %v1091_v13  ;;  %v732_v49 = vadd.f32 %v731_v47, %v676_v45  ;;  %v733_v50 = vpop.f32.mrb[7].mxu0 }
 0x3d1   : > { %v737_v52 = vadd.f32 %v730_v46, %v1093_v14  ;;  %v734_v53 = vadd.f32 %v733_v50, %v676_v45 }
 0x3d2   : > { %740 = vst [vmem:[%s217_s10] sm:$0xff] %v736_v48  ;;  %v738_v54 = vadd.f32 %v732_v49, %v1097_v19 }
 0x3d3   : > { %741 = vst [vmem:[%s217_s10 + $0x8] sm:$0xff] %v737_v52  ;;  %v739_v55 = vadd.f32 %v734_v53, %v1099_v20 }
 0x3d4   : > { %742 = vst [vmem:[%s217_s10 + $0x10] sm:$0xff] %v738_v54 }
 0x3d5   : > { %743 = vst [vmem:[%s217_s10 + $0x18] sm:$0xff] %v739_v55 }
 0x3d6   : > { %917 = shalt.err (!%p914_p3)
}
 0x3d7   : > { %s918_s16 = scalar_lea.hbm %s1185_s23, 512  ;;  %s922_s8 = scalar_lea.hbm %s1234_s5, 1024 }
 0x3d8   : > { %p919_p4 = scmp.ne.s32.totalorder %s1185_s23, %s918_s16  ;;  %p923_p9 = scmp.lt.u32.totalorder %s1185_s23, %s1234_s5 }
 0x3d9   : > { %p924_p10 = scmp.lt.u32.totalorder %s922_s8, %s918_s16  ;;  %p926_p12 = scmp.lt.u32.totalorder %s918_s16, %s1185_s23 }
 0x3da   : > { %p920_p7 = pnand %p919_p4, %p1047_p5 }
 0x3db   : > { %p925_p11 = por %p924_p10, %p923_p9 }
 0x3dc   : > { %p921_p8 = pneg %p920_p7 }
 0x3dd   : > { %p927_p13 = por %p926_p12, %p925_p11 }
 0x3df   : > { %p928_p0 = pnand %p927_p13, %p921_p8 }
 0x3e1   : > { %931 = shalt.err (!%p928_p0)
}
 0x3e2   : > { %s978_s13 = smov 256  }
 0x3e3   : > { %852 = dma.vmem_to_hbm [thread:$0]  (%p1047_p5), %s1178_s11, 512, %s1185_s23, %s1187_s22, %s978_s13, %s978_s13, %s975_s12  }
 0x3e4 PF: > { %p858_p1 = scmp.ge.s32.totalorder %s966_s21, 2  ;;  %s773_s14 = sand.u32 1, %s954_s18  }
 0x3e5   : > { %s774_s17 = scalar_lea.sflag [#allocation5], %s773_s14 }
 0x3e6   : > { %p855_p2 = pnand %p858_p1, %p1051_p6 }
 0x3e8   : > { %949 = dma.done.wait (!%p855_p2), %s774_s17, 512  }
 0x3e9   : > { %951 = vsyncadd (!%p855_p2), %s774_s17, 4294966784  ;;  %p15_p3 = scmp.ge.s32.totalorder %s1034_s24, 4   ;;  %s1237_s18 = smov %s958_s19 }
 0x3ea   : > { %s1238_s19 = smov %s962_s20  ;;  %s1239_s20 = smov %s1045_s27 }
 0x3eb   : > { %s1240_s21 = smov %s1034_s24  ;;  %17 = sbr.rel (!%p15_p3) target bundleno = 3 (0x3), region = 75 }
 0x3f2   :  { %779 = vsyncpa [#allocation5], 1 }
 0x3f3   :  { %781 = vsyncpa [#allocation5 + $0x1], 1 }

</bundles_post_ra>
